<compile_context>
chip_gen: v7x
topology: tpu7x:2x2x1
jax: 0.10.0
libtpu: 0.0.40
codegen_flags: <defaults>
</compile_context>

<pallas_src>
import jax
import jax.numpy as jnp
from jax.experimental import pallas as pl
from jax.experimental.pallas import tpu as pltpu


def _down_wt_kernel(x_ref, w_ref, b_ref, o_ref):
    # x_ref: (1, 4C, TP)   rows = [a(C), b(C), c(C), d(C)], pixels on lanes
    # w_ref: (out_ch, 4C)  Haar-folded 1x1-conv weight
    # b_ref: (out_ch, 1)   bias (f32)
    # o_ref: (1, out_ch, TP)
    acc = jnp.dot(w_ref[...], x_ref[0], preferred_element_type=jnp.float32)
    acc += b_ref[...].astype(jnp.float32)
    o_ref[0] = jnp.maximum(acc, 0.0).astype(o_ref.dtype)


def unet_down(x, weight, bias, *, tp=1024):
    """x: (N, C, H, W); weight: (out_ch, 4*C, 1, 1); bias: (out_ch,).
    Returns (N, out_ch, ceil(H/2), ceil(W/2)) — matches Down_wt forward."""
    N, C, H, W = x.shape
    out_ch = weight.shape[0]

    # mode='zero': odd spatial dims are zero-padded at the bottom/right.
    pad_h, pad_w = H % 2, W % 2
    if pad_h or pad_w:
        x = jnp.pad(x, ((0, 0), (0, 0), (0, pad_h), (0, pad_w)))
    H, W = H + pad_h, W + pad_w
    H2, W2 = H // 2, W // 2
    P = H2 * W2

    # --- fold the Haar transform into the 1x1-conv weight (done once, f32) ---
    w = weight.reshape(out_ch, 4, C).astype(jnp.float32)
    w_ll, w_h0, w_h1, w_h2 = w[:, 0], w[:, 1], w[:, 2], w[:, 3]
    wa = 0.5 * (w_ll + w_h0 + w_h1 + w_h2)   # coeff of top-left pixel
    wb = 0.5 * (w_ll + w_h0 - w_h1 - w_h2)   # top-right
    wc = 0.5 * (w_ll - w_h0 + w_h1 - w_h2)   # bottom-left
    wd = 0.5 * (w_ll - w_h0 - w_h1 + w_h2)   # bottom-right
    wfold = jnp.concatenate([wa, wb, wc, wd], axis=1).astype(x.dtype)  # (out_ch, 4C)
    b2d = bias.reshape(out_ch, 1).astype(jnp.float32)

    # --- NCHW -> (N, 4C, H2*W2): one XLA transpose pass; output needs none ---
    x6 = x.reshape(N, C, H2, 2, W2, 2)
    x6 = jnp.transpose(x6, (0, 3, 5, 1, 2, 4))        # (N, 2, 2, C, H2, W2)
    x4 = x6.reshape(N, 4 * C, P)                      # rows = [a(C),b(C),c(C),d(C)]

    # --- pixel-tile size: multiple of 128, capped by a VMEM budget ---
    itemsize = jnp.dtype(x.dtype).itemsize
    per_col = 2 * (4 * C + out_ch) * itemsize         # double-buffered in+out bytes / pixel
    budget = 24 * 1024 * 1024
    tp_cap = max(128, (budget // per_col) // 128 * 128)
    tp_eff = min(tp, tp_cap)
    if P <= tp_eff:
        TP, grid_p = P, 1                             # full dim -> always layout-legal
    else:
        TP, grid_p = tp_eff, pl.cdiv(P, tp_eff)       # partial last block is masked

    flops = 2 * N * P * (4 * C) * out_ch
    bytes_accessed = (N * 4 * C * P + out_ch * 4 * C + N * out_ch * P) * itemsize + out_ch * 4

    out = pl.pallas_call(
        _down_wt_kernel,
        out_shape=jax.ShapeDtypeStruct((N, out_ch, P), x.dtype),
        grid=(N, grid_p),
        in_specs=[
            pl.BlockSpec((1, 4 * C, TP), lambda n, j: (n, 0, j)),
            pl.BlockSpec((out_ch, 4 * C), lambda n, j: (0, 0)),
            pl.BlockSpec((out_ch, 1), lambda n, j: (0, 0)),
        ],
        out_specs=pl.BlockSpec((1, out_ch, TP), lambda n, j: (n, 0, j)),
        compiler_params=pltpu.CompilerParams(
            dimension_semantics=("parallel", "parallel"),
            vmem_limit_bytes=48 * 1024 * 1024,
        ),
        cost_estimate=pl.CostEstimate(
            flops=flops, transcendentals=0, bytes_accessed=bytes_accessed),
    )(x4, wfold, b2d)

    return out.reshape(N, out_ch, H2, W2)             # free reshape, already NCHW


def _reference(x, weight, bias):
    """Pure-JAX reference of the PyTorch forward (Haar DWT + 1x1 conv + ReLU)."""
    a = x[:, :, 0::2, 0::2]
    b = x[:, :, 0::2, 1::2]
    c = x[:, :, 1::2, 0::2]
    d = x[:, :, 1::2, 1::2]
    ll = (a + b + c + d) * 0.5
    h0 = (a + b - c - d) * 0.5
    h1 = (a - b + c - d) * 0.5
    h2 = (a - b - c + d) * 0.5
    cat = jnp.concatenate([ll, h0, h1, h2], axis=1)
    w2d = weight.reshape(weight.shape[0], -1)
    y = jnp.einsum('nchw,oc->nohw', cat, w2d) + bias[None, :, None, None]
    return jnp.maximum(y, 0.0)


if __name__ == "__main__":
    in_chans, out_chans = 4, 8
    N, H, W = 2, 16, 16

    key = jax.random.PRNGKey(0)
    kx, kw, kb = jax.random.split(key, 3)

    x = jax.random.normal(kx, (N, in_chans, H, W), dtype=jnp.float32)
    fan_in = 4 * in_chans
    bound = 1.0 / (fan_in ** 0.5)
    conv_w = jax.random.uniform(kw, (out_chans, 4 * in_chans, 1, 1),
                                minval=-bound, maxval=bound, dtype=jnp.float32)
    conv_b = jax.random.uniform(kb, (out_chans,),
                                minval=-bound, maxval=bound, dtype=jnp.float32)

    y = unet_down(x, conv_w, conv_b)
    y = jax.block_until_ready(y)

    y_ref = _reference(x, conv_w, conv_b)
    assert y.shape == (N, out_chans, H // 2, W // 2)
    assert bool(jnp.allclose(y, y_ref, atol=1e-4, rtol=1e-4))

    print("KERNEL_OK")
</pallas_src>

<mosaic_0001>
module attributes {stable_mosaic.version = 11 : i64} {
  func.func @_down_wt_kernel(%arg0: i32, %arg1: i32, %arg2: memref<1x16x64xf32, #tpu.memory_space<vmem>>, %arg3: memref<8x16xf32, #tpu.memory_space<vmem>>, %arg4: memref<8x1xf32, #tpu.memory_space<vmem>>, %arg5: memref<1x8x64xf32, #tpu.memory_space<vmem>>) attributes {dimension_semantics = [#tpu.dimension_semantics<parallel>, #tpu.dimension_semantics<parallel>], iteration_bounds = array<i64: 2, 1>, scalar_prefetch = 0 : i64, scratch_operands = 0 : i64, tpu.core_type = #tpu.core_type<tc>, window_params = [{transform_indices = @transform_0, window_bounds = array<i64: 1, 16, 64>}, {pipeline_mode = #tpu.pipeline_mode<synchronous>, transform_indices = @transform_1, window_bounds = array<i64: 8, 16>}, {pipeline_mode = #tpu.pipeline_mode<synchronous>, transform_indices = @transform_2, window_bounds = array<i64: 8, 1>}, {transform_indices = @transform_3, window_bounds = array<i64: 1, 8, 64>}]} {
    %c0 = arith.constant 0 : index
    %c0_0 = arith.constant 0 : index
    %0 = vector.load %arg3[%c0, %c0_0] : memref<8x16xf32, #tpu.memory_space<vmem>>, vector<8x16xf32>
    %c0_1 = arith.constant 0 : index
    %c0_2 = arith.constant 0 : index
    %c0_3 = arith.constant 0 : index
    %1 = vector.load %arg2[%c0_1, %c0_2, %c0_3] : memref<1x16x64xf32, #tpu.memory_space<vmem>>, vector<1x16x64xf32>
    %2 = vector.shape_cast %1 : vector<1x16x64xf32> to vector<16x64xf32>
    %cst = arith.constant dense<0.000000e+00> : vector<8x64xf32>
    %3 = tpu.matmul %0, %2, %cst {dimension_numbers = #tpu.dot_dimension_numbers<[1], [0], [0], [1], [0, 0, 1, 1], [], []>} : vector<8x16xf32>, vector<16x64xf32>, vector<8x64xf32> -> vector<8x64xf32>
    %c0_4 = arith.constant 0 : index
    %c0_5 = arith.constant 0 : index
    %4 = vector.load %arg4[%c0_4, %c0_5] : memref<8x1xf32, #tpu.memory_space<vmem>>, vector<8x1xf32>
    %5 = vector.broadcast %4 : vector<8x1xf32> to vector<8x64xf32>
    %6 = arith.addf %3, %5 : vector<8x64xf32>
    %cst_6 = arith.constant 0.000000e+00 : f32
    %7 = vector.broadcast %cst_6 : f32 to vector<8x64xf32>
    %8 = arith.maximumf %6, %7 : vector<8x64xf32>
    %c0_7 = arith.constant 0 : index
    %c0_8 = arith.constant 0 : index
    %c0_9 = arith.constant 0 : index
    %9 = vector.load %arg5[%c0_7, %c0_8, %c0_9] : memref<1x8x64xf32, #tpu.memory_space<vmem>>, vector<1x8x64xf32>
    %10 = vector.shape_cast %9 : vector<1x8x64xf32> to vector<8x64xf32>
    %11 = vector.shape_cast %8 : vector<8x64xf32> to vector<1x8x64xf32>
    tpu.vector_store %arg5[%c0_7, %c0_8, %c0_9], %11 {strides = array<i32>} : memref<1x8x64xf32, #tpu.memory_space<vmem>>, vector<1x8x64xf32>,
    return
  }
  func.func @transform_0(%arg0: i32, %arg1: i32) -> (i32, i32, i32) {
    %c0_i32 = arith.constant 0 : i32
    %c0_i32_0 = arith.constant 0 : i32
    return %arg0, %c0_i32, %arg1 : i32, i32, i32
  }
  func.func @transform_1(%arg0: i32, %arg1: i32) -> (i32, i32) {
    %c0_i32 = arith.constant 0 : i32
    %c0_i32_0 = arith.constant 0 : i32
    %c0_i32_1 = arith.constant 0 : i32
    return %c0_i32, %c0_i32_0 : i32, i32
  }
  func.func @transform_2(%arg0: i32, %arg1: i32) -> (i32, i32) {
    %c0_i32 = arith.constant 0 : i32
    %c0_i32_0 = arith.constant 0 : i32
    %c0_i32_1 = arith.constant 0 : i32
    return %c0_i32, %c0_i32_0 : i32, i32
  }
  func.func @transform_3(%arg0: i32, %arg1: i32) -> (i32, i32, i32) {
    %c0_i32 = arith.constant 0 : i32
    %c0_i32_0 = arith.constant 0 : i32
    return %arg0, %c0_i32, %arg1 : i32, i32, i32
  }
}

</mosaic_0001>

<bundles_post_ra>
// kernel: tpu_custom_call.1
= control target key start
LH: loop header
LB: loop body
LE: loop exit
PB: predicated region body
PF: predicated region fallthrough
CT: control target
= control target key end

     0   :  { %8 = vsyncpa [#allocation3], 0  ;;  %s808_s0 = inlined_call_operand.hbm [shape: f32[2,16,64], index: 0, kind: input, shape index: {}]   ;;  %s809_s1 = inlined_call_operand.vmem [shape: f32[8,16], index: 1, kind: input, shape index: {}]   ;;  %s810_s2 = inlined_call_operand.vmem [shape: f32[8,1], index: 2, kind: input, shape index: {}]   ;;  %s811_s3 = inlined_call_operand.hbm [shape: f32[2,8,64], index: 3, kind: output, shape index: {}]  }
   0x1   :  { %10 = vsyncpa [#allocation3 + $0x1], 0 }
   0x2   :  { %11 = vsyncpa [#allocation4], 0 }
   0x3   :  { %13 = vsyncpa [#allocation4 + $0x1], 0  ;;  %s628_s12 = smov 0   ;;  %s630_s13 = smov 0  }
   0x4   :  { %s632_s14 = smov 0   ;;  %s634_s15 = smov 0  }
   0x5   :  { %s636_s16 = smov 0   ;;  %s638_s17 = smov 0  }
   0x6 LB: > { %s388_s18 = sadd.s32 4294967295, %s598_s17   ;;  %s389_s19 = sadd.s32 4294967294, %s598_s17   ;;  %s598_s17 = sphi %s638_s17, %s19_s17   ;;  %s594_s16 = sphi %s636_s16, %s826_s16   ;;  %s590_s15 = sphi %s634_s15, %s825_s15   ;;  %s586_s14 = sphi %s632_s14, %s824_s14   ;;  %s582_s13 = sphi %s630_s13, %s823_s13   ;;  %s578_s12 = sphi %s628_s12, %s822_s12  }
   0x7   : > { %s31_s20 = sadd.s32 1, %s594_s16  ;;  %s40_s21 = sadd.s32 1, %s586_s14 }
   0x8   : > { %p33_p0 = scmp.ge.s32.totalorder %s31_s20, 2  ;;  %p47_p1 = scmp.ne.s32.totalorder %s586_s14, %s582_s13 }
   0x9   : > { %p48_p2 = scmp.eq.s32.totalorder %s598_s17, 0  ;;  %p53_p3 = scmp.ne.s32.totalorder %s582_s13, %s578_s12 }
   0xa   : > { %s828_s20 = smov (%p33_p0, %s31_s20), 0  ;;  %p54_p5 = scmp.eq.s32.totalorder %s388_s18, 0 }
   0xb   : > { %p669_p4 = por %p48_p2, %p47_p1  ;;  %s35_s23 = ssub.s32 %s594_s16, %s828_s20 }
   0xc   : > { %p121_p6 = scmp.eq.s32.totalorder %s388_s18, 1  ;;  %p38_p7 = scmp.eq.s32.totalorder %s35_s23, 0 }
   0xd   : > { %p675_p8 = por %p54_p5, %p53_p3  ;;  %p127_p10 = scmp.eq.s32.totalorder %s389_s19, 1 }
   0xe   : > { %p679_p9 = por %p121_p6, %p47_p1  ;;  %p429_p13 = scmp.lt.s32.totalorder %s598_s17, 2 }
   0xf   : > { %s684_s26 = scalar_select %p38_p7, %s586_s14, %s40_s21  }
  0x10   : > { %s815_s25 = scalar_select %p679_p9, 1, 0 }
  0x11   : > { %p686_p11 = por %p127_p10, %p53_p3  ;;  %s153_s28 = sand.u32 1, %s586_s14  }
  0x12   : > { %s392_s29 = sshll.u32 %s153_s28, 4  ;;  %s403_s30 = sshll.u32 %s594_s16, 8 }
  0x13   : > { %s816_s27 = scalar_select %p686_p11, 1, 0 }
  0x14   : > { %s697_s6 = scalar_lea.hbm %s808_s0, %s403_s30  ;;  %s157_s7 = scalar_lea.vmem [#allocation2], %s392_s29 }
  0x15   : > { %s165_s8 = sshll.u32 %s157_s7, 4  ;;  %p703_p0 = pnand %p429_p13, %p669_p4  ;;  %s699_s8 = int_to_ptr.vmem [resolvable:$true] %s165_s8 }
  0x16   : > { %s708_s10 = scalar_lea.sflag [#allocation3], %s153_s28  ;;  %s486_s11 = scalar_lea.hbm %s697_s6, 256 }
  0x17   : > { %p487_p2 = scmp.ne.s32.totalorder %s697_s6, %s486_s11  ;;  %p488_p3 = pneg %p703_p0 }
  0x18   : > { %s491_s21 = scalar_lea.hbm %s808_s0, 512  ;;  %p492_p4 = scmp.lt.u32.totalorder %s697_s6, %s808_s0 }
  0x19   : > { %p489_p5 = pnand %p488_p3, %p487_p2  ;;  %p493_p7 = scmp.lt.u32.totalorder %s491_s21, %s486_s11 }
  0x1a   : > { %p495_p13 = scmp.lt.u32.totalorder %s486_s11, %s697_s6 }
  0x1b   : > { %p490_p6 = pneg %p489_p5  ;;  %p494_p10 = por %p493_p7, %p492_p4 }
  0x1d   : > { %p496_p12 = por %p495_p13, %p494_p10 }
  0x1f   : > { %p497_p1 = pnand %p496_p12, %p490_p6 }
  0x21   : > { %500 = shalt.err (!%p497_p1)
}
  0x22   : > { %s501_s28 = scalar_lea.vmem %s699_s8, 256  ;;  %s600_s29 = smov [#allocation2]  }
  0x23   : > { %p502_p2 = scmp.ne.s32.totalorder %s699_s8, %s501_s28  ;;  %s506_s30 = sshll.u32 %s600_s29, 4  ;;  %s507_s30 = int_to_ptr.vmem [resolvable:$false] %s506_s30 }
  0x24   : > { %s508_s4 = scalar_lea.vmem %s507_s30, 512  ;;  %p509_p9 = scmp.lt.s32.totalorder %s699_s8, %s507_s30 }
  0x25   : > { %p504_p5 = pnand %p502_p2, %p488_p3  ;;  %p510_p4 = scmp.lt.s32.totalorder %s508_s4, %s501_s28 }
  0x27   : > { %p505_p11 = pneg %p504_p5  ;;  %p511_p7 = por %p510_p4, %p509_p9 }
  0x29   : > { %p512_p10 = pnand %p511_p7, %p505_p11 }
  0x2b   : > { %515 = shalt.err (!%p512_p10)
}
  0x2c   : > { %s601_s5 = smov 128   ;;  %s602_s7 = smov 8  }
  0x2d   : > { %424 = dma.hbm_to_vmem [thread:$0]  (!%p703_p0), %s697_s6, 256, %s699_s8, %s708_s10, %s601_s5, %s601_s5, %s602_s7  }
  0x2e   : > { %p173_p12 = scmp.lt.s32.totalorder %s598_s17, 3  ;;  %p818_p1 = scmp.ge.s32.totalorder %s598_s17, 1 }
  0x30   : > { %p174_p3 = pnand %p818_p1, %p173_p12 }
  0x31   : > { %s740_s11 = sand.u32 (!%p174_p3), 1, %s582_s13  }
  0x32   : > { %177 = sbr.rel (%p174_p3) target bundleno = 295 (0x127), region = 32  ;;  %s396_s18 = sshll.u32 (!%p174_p3), %s740_s11, 4 }
  0x33   : > { %s180_s19 = scalar_lea.sflag (!%p174_p3), [#allocation3], %s740_s11  ;;  %s183_s21 = scalar_lea.vmem (!%p174_p3), [#allocation2], %s396_s18 }
  0x39   : > { %569 = dma.done.wait (%p675_p8), %s180_s19, 256  }
  0x3a   : > { %571 = vsyncadd (%p675_p8), %s180_s19, 4294967040  ;;  %v603_v0 = vmov 0.0|0.0   ;;  %vm604_vm0 = vmmov 0   ;;  %v605_v1 = vmov 0.0   ;;  %v606_v2 = vmov 0   ;;  %v207_v3 = vld [vmem:[%s183_s21] sm:$0xff] }
  0x3b   : > { %414 = vmatprep.subr.bf16.mxu0 %v603_v0  ;;  %411 = vmatprep.mubr.msk.f32.mxu0 %vm604_vm0, %v605_v1  ;;  %v208_v4 = vld [vmem:[%s183_s21 + $0x8] sm:$0xff]  ;;  %v209_v6 = vld [vmem:[%s810_s2] sm:$0xff]  ;;  %vm215_vm1 = vcmask 130048   ;;  %s397_s10 = sshll.u32 %s740_s11, 3  ;;  %s400_s22 = sshll.u32 %s590_s15, 7  ;;  %vm290_vm2 = vcmask 523264  }
  0x3c   : > { %485 = vset.pattern.permute.xlu0 %v606_v2  ;;  %v415_v5 = vpack.c.bf16 %v208_v4, %v207_v3  ;;  %v206_v7 = vld [vmem:[%s809_s1] sm:$0xff]  ;;  %s205_s23 = scalar_lea.vmem [#allocation5], %s397_s10  ;;  %s759_s4 = scalar_lea.hbm %s811_s3, %s400_s22 }
  0x3d   : > { %212 = vperm.xlu0 %485, %v209_v6   ;;  %s307_s28 = sshll.u32 %s205_s23, 4  ;;  %s293_s5 = scalar_lea.sflag [#allocation4], %s740_s11  ;;  %s761_s28 = int_to_ptr.vmem [resolvable:$true] %s307_s28 }
  0x3e   : > { %416 = vmatpush3.bf16.msra.mxu0 %v415_v5  ;;  %s516_s7 = scalar_lea.vmem %s761_s28, 128  ;;  %p819_p9 = scmp.ne.s32.totalorder %s815_s25, 0 }
  0x3f   : > { %p517_p8 = scmp.ne.s32.totalorder %s761_s28, %s516_s7  ;;  %s607_s15 = smov [#allocation5]  }
  0x40   : > { %s520_s18 = sshll.u32 %s607_s15, 4  ;;  %s521_s18 = int_to_ptr.vmem [resolvable:$false] %s520_s18 }
  0x41   : > { %412 = vmatmul.mubr.msk.f32.vlgmr.msra.gmra.mrb[0].mxu0 %vm215_vm1, %v206_v7  ;;  %p518_p11 = pnand %p517_p8, %p819_p9  ;;  %s522_s19 = scalar_lea.vmem %s521_s18, 256 }
  0x42   : > { %p523_p6 = scmp.lt.s32.totalorder %s761_s28, %s521_s18  ;;  %p524_p13 = scmp.lt.s32.totalorder %s522_s19, %s516_s7 }
  0x43   : > { %p519_p0 = pneg %p518_p11 }
  0x44   : > { %p525_p2 = por %p524_p13, %p523_p6 }
  0x46   : > { %p526_p5 = pnand %p525_p2, %p519_p0 }
  0xbc   : > { %v213_v8 = vpop.permute.xlu0 %212 }
 0x114   : > { %v285_v9 = vpop.f32.mrb[0].mxu0 }
 0x115   : > { %v286_v10 = vadd.f32 %v285_v9, %v213_v8  ;;  %v413_v11 = vpop.f32.mrb[1].mxu0 }
 0x117   : > { %v289_v12 = vmax.f32 %v286_v10, 0.0 }
 0x119   : > { %291 = vst.msk [vmem:[%s205_s23] sm:$0xff] %vm290_vm2, %v289_v12 }
 0x11a   : > { %529 = shalt.err (!%p526_p5)
}
 0x11b   : > { %s530_s11 = scalar_lea.hbm %s759_s4, 128  ;;  %s534_s8 = scalar_lea.hbm %s811_s3, 256 }
 0x11c   : > { %p531_p4 = scmp.ne.s32.totalorder %s759_s4, %s530_s11  ;;  %p535_p12 = scmp.lt.u32.totalorder %s759_s4, %s811_s3 }
 0x11d   : > { %p536_p1 = scmp.lt.u32.totalorder %s534_s8, %s530_s11  ;;  %p538_p8 = scmp.lt.u32.totalorder %s530_s11, %s759_s4 }
 0x11e   : > { %p532_p7 = pnand %p531_p4, %p819_p9 }
 0x11f   : > { %p537_p3 = por %p536_p1, %p535_p12 }
 0x120   : > { %p533_p10 = pneg %p532_p7 }
 0x121   : > { %p539_p11 = por %p538_p8, %p537_p3 }
 0x123   : > { %p540_p0 = pnand %p539_p11, %p533_p10 }
 0x125   : > { %543 = shalt.err (!%p540_p0)
}
 0x126   : > { %419 = dma.vmem_to_hbm [thread:$0]  (%p819_p9), %s761_s28, 128, %s759_s4, %s293_s5  }
 0x127 PF: > { %s319_s10 = sand.u32 1, %s578_s12   ;;  %p820_p6 = scmp.ne.s32.totalorder %s816_s27, 0 }
 0x128   : > { %p821_p13 = scmp.ge.s32.totalorder %s598_s17, 2  ;;  %s320_s22 = scalar_lea.sflag [#allocation4], %s319_s10 }
 0x12a   : > { %p426_p2 = pnand %p821_p13, %p820_p6 }
 0x12c   : > { %573 = dma.done.wait (!%p426_p2), %s320_s22, 128  }
 0x12d   : > { %575 = vsyncadd (!%p426_p2), %s320_s22, 4294967168  ;;  %s19_s17 = sadd.s32 1, %s598_s17   ;;  %s822_s12 = smov %s582_s13 }
 0x12e   : > { %p16_p5 = scmp.ge.s32.totalorder %s19_s17, 4   ;;  %s823_s13 = smov %s586_s14 }
 0x12f   : > { %s824_s14 = smov %s684_s26  ;;  %s825_s15 = smov %s594_s16 }
 0x130   : > { %s826_s16 = smov %s828_s20  ;;  %18 = sbr.rel (!%p16_p5) target bundleno = 6 (0x6), region = 77 }
 0x137   :  { %325 = vsyncpa [#allocation3], 1 }
 0x138   :  { %327 = vsyncpa [#allocation3 + $0x1], 1 }
 0x139   :  { %328 = vsyncpa [#allocation4], 1 }
 0x13a   :  { %330 = vsyncpa [#allocation4 + $0x1], 1 }

</bundles_post_ra>
